<compile_context>
chip_gen: v5e
topology: v5e:2x2
jax: 0.10.0
libtpu: 0.0.40
codegen_flags: <defaults>
</compile_context>

<pallas_src>
import jax
import jax.numpy as jnp
from jax import lax
from jax.experimental import pallas as pl
from jax.experimental.pallas import tpu as pltpu


def _round_up(x, m):
    return (x + m - 1) // m * m


def _conv3d_relu_stage(a, w_taps, bias, mask, Wp, S_pad):
    """One Conv3d(k=3, pad=1) + bias + ReLU stage on the internal layout.

    a      : (N, D, Cin_p, S_pad) bf16.  S_pad = round_up(Hp*Wp, 128); the
             spatial halo ring and the padded tail columns of every depth
             slice are zero.  Depth is NOT padded (kernel synthesises it).
    w_taps : (27, Cout_p, 3*Cin_p) bf16 phase-permuted taps:
             index = phase*9 + kh*3 + kw; K block g holds kd = (g-phase+2)%3.
    bias   : (Cout_p, 1) f32.
    mask   : (1, S_pad) f32; 1.0 on interior spatial positions, 0 on halo/tail.
    returns: (N, D, Cout_p, S_pad) bf16 in the same layout.
    """
    N, D, Cin_p, S_pad_ = a.shape
    assert S_pad_ == S_pad and D >= 1
    n_taps, Cout_p, K3 = w_taps.shape
    assert n_taps == 27 and K3 == 3 * Cin_p

    PAD = _round_up(Wp + 1, 128)          # lane-aligned guard, >= max |tap shift|
    S_guard = PAD + S_pad + PAD

    def kernel(x_ref, w_ref, b_ref, m_ref, o_ref, slab_ref):
        j = pl.program_id(1)
        nj = pl.num_programs(1)                       # = D + 1
        g_off = pl.multiple_of((j % 3) * Cin_p, Cin_p)

        # Once per (n, stage): zero the lane guards and the slab group that
        # plays the role of depth slice "-1" (zero padding below the volume).
        @pl.when(j == 0)
        def _():
            zdt = slab_ref.dtype
            slab_ref[:, 0:PAD] = jnp.zeros((3 * Cin_p, PAD), zdt)
            slab_ref[:, PAD + S_pad:S_guard] = jnp.zeros((3 * Cin_p, PAD), zdt)
            slab_ref[2 * Cin_p:3 * Cin_p, PAD:PAD + S_pad] = jnp.zeros(
                (Cin_p, S_pad), zdt)

        # Rolling depth buffer: depth slice j lands in row-group j % 3.
        # Each slice is DMA'd from HBM exactly once per stage.
        @pl.when(j < nj - 1)
        def _():
            slab_ref[pl.ds(g_off, Cin_p), PAD:PAD + S_pad] = x_ref[0, 0]

        # Extra pipeline-drain step: slice "D" is the zero padding above.
        @pl.when(j == nj - 1)
        def _():
            slab_ref[pl.ds(g_off, Cin_p), PAD:PAD + S_pad] = jnp.zeros(
                (Cin_p, S_pad), slab_ref.dtype)

        # Compute output depth d = j - 1 from slices d-1, d, d+1.  The kd ->
        # slab-group rotation is folded into the phase-permuted weights, so no
        # slab rebuild is needed; taps accumulate in a local f32 value.
        @pl.when(j > 0)
        def _():
            phase = j % 3
            acc = None
            for t in range(9):
                kh, kw = t // 3, t % 3
                shift = (kh - 1) * Wp + (kw - 1)
                xs = slab_ref[:, PAD + shift:PAD + shift + S_pad]  # (3*Cin_p, S_pad)
                w_t = w_ref[phase * 9 + t]                         # (Cout_p, 3*Cin_p)
                c = jnp.dot(w_t, xs, preferred_element_type=jnp.float32)
                acc = c if acc is None else acc + c
            y = jnp.maximum(acc + b_ref[...], 0.0)
            # Re-zero the spatial halo ring / padded tail so the next stage
            # (and the final crop) sees correct zero padding.
            o_ref[0, 0] = jnp.where(m_ref[...] > 0.0, y, 0.0).astype(o_ref.dtype)

    # Right-sized VMEM budget: actual per-step footprint x2 headroom,
    # clamped to [16 MiB, 40 MiB] (safe on v7x's 64 MiB physical VMEM).
    footprint = (2 * Cin_p * S_pad * 2        # input slice, double-buffered
                 + 2 * Cout_p * S_pad * 2     # output slice, double-buffered
                 + 3 * Cin_p * S_guard * 2    # rolling slab scratch
                 + 27 * Cout_p * K3 * 2       # weights (fetched once)
                 + Cout_p * 4 + S_pad * 4)    # bias + mask
    vmem_limit = int(min(40 * 2 ** 20, max(16 * 2 ** 20, 2 * footprint)))

    return pl.pallas_call(
        kernel,
        out_shape=jax.ShapeDtypeStruct((N, D, Cout_p, S_pad), jnp.bfloat16),
        grid_spec=pltpu.PrefetchScalarGridSpec(
            num_scalar_prefetch=0,
            grid=(N, D + 1),
            in_specs=[
                # One depth slice per step (clamped at the drain step, where the
                # block index repeats so Pallas skips the re-fetch).
                pl.BlockSpec((1, 1, Cin_p, S_pad),
                             lambda n, j: (n, jnp.minimum(j, D - 1), 0, 0)),
                # Weights / bias / mask: constant index maps -> DMA'd once.
                pl.BlockSpec((27, Cout_p, K3), lambda n, j: (0, 0, 0)),
                pl.BlockSpec((Cout_p, 1), lambda n, j: (0, 0)),
                pl.BlockSpec((1, S_pad), lambda n, j: (0, 0)),
            ],
            # Output depth d = j - 1 (the j = 0 step only primes the slab).
            out_specs=pl.BlockSpec((1, 1, Cout_p, S_pad),
                                   lambda n, j: (n, jnp.maximum(j - 1, 0), 0, 0)),
            scratch_shapes=[pltpu.VMEM((3 * Cin_p, S_guard), jnp.bfloat16)],
        ),
        compiler_params=pltpu.CompilerParams(
            dimension_semantics=("parallel", "arbitrary"),
            vmem_limit_bytes=vmem_limit,
        ),
    )(a, w_taps, bias, mask)


def init_conv_block_params(key, n_stages, n_filters_in, n_filters_out):
    """Deterministic PyTorch-style init; PyTorch shapes:
    weight (Cout, Cin, 3, 3, 3), bias (Cout,)."""
    params = []
    cin = n_filters_in
    for _ in range(n_stages):
        key, kw, kb = jax.random.split(key, 3)
        bound = 1.0 / jnp.sqrt(jnp.float32(cin * 27))
        w = jax.random.uniform(kw, (n_filters_out, cin, 3, 3, 3),
                               jnp.float32, -bound, bound)
        b = jax.random.uniform(kb, (n_filters_out,), jnp.float32, -bound, bound)
        params.append((w, b))
        cin = n_filters_out
    return params


def _pack_stage_weights(w, b, cin_p):
    """(Cout, Cin, 3, 3, 3) -> phase-permuted (27, Cout_p, 3*Cin_p) bf16 taps.

    Tap index = phase*9 + kh*3 + kw; K block g holds kd = (g - phase + 2) % 3,
    matching a rolling slab where depth slice s lives in row-group s % 3.
    """
    cout, cin = int(w.shape[0]), int(w.shape[1])
    cout_p = _round_up(cout, 8)
    w_pad = jnp.pad(w, ((0, cout_p - cout), (0, cin_p - cin),
                        (0, 0), (0, 0), (0, 0)))
    taps = []
    for p in range(3):
        for kh in range(3):
            for kw in range(3):
                blocks = [w_pad[:, :, (g - p + 2) % 3, kh, kw] for g in range(3)]
                taps.append(jnp.concatenate(blocks, axis=1))     # (Cout_p, 3*Cin_p)
    w_taps = jnp.stack(taps, axis=0).astype(jnp.bfloat16)
    b_pad = jnp.pad(b, ((0, cout_p - cout),)).astype(jnp.float32).reshape(cout_p, 1)
    return w_taps, b_pad, cout_p


@jax.jit
def conv_block_forward(x_ncdhw, params):
    """ConvBlock forward (normalization='none'): repeated Conv3d(k3,p1)+ReLU.

    Externally NCDHW like PyTorch; internally a bf16, lane-dense, zero-halo
    layout (N, D, C_pad, S_pad) is kept across all stages (single pad on
    entry / crop on exit; depth halo synthesised in-kernel).
    """
    N, c_in, D, H, W = x_ncdhw.shape
    Hp, Wp = H + 2, W + 2
    S = Hp * Wp
    S_pad = _round_up(S, 128)

    cur_c = int(c_in)
    cur_cp = _round_up(cur_c, 8)

    # Interior-validity mask (computed once, shared by every stage).
    cols = jnp.arange(S_pad, dtype=jnp.int32)
    hh, ww = cols // Wp, cols % Wp
    valid = (cols < S) & (hh >= 1) & (hh <= Hp - 2) & (ww >= 1) & (ww <= Wp - 2)
    mask = valid.astype(jnp.float32).reshape(1, S_pad)

    # Entry transform, done once and directly in bf16:
    # NCDHW -> (N, D, Cin_p, S_pad) with zero spatial halo ring and zero tail.
    xt = jnp.transpose(x_ncdhw, (0, 2, 1, 3, 4)).astype(jnp.bfloat16)  # (N,D,C,H,W)
    xt = jnp.pad(xt, ((0, 0), (0, 0), (0, cur_cp - cur_c), (1, 1), (1, 1)))
    a = xt.reshape(N, D, cur_cp, S)
    a = jnp.pad(a, ((0, 0), (0, 0), (0, 0), (0, S_pad - S)))

    for w, b in params:
        assert int(w.shape[1]) == cur_c
        w_taps, b_pad, cout_p = _pack_stage_weights(w, b, cur_cp)
        a = _conv3d_relu_stage(a, w_taps, b_pad, mask, Wp, S_pad)
        cur_c, cur_cp = int(w.shape[0]), cout_p

    # Exit transform: drop padded channels / halo ring / tail, back to NCDHW.
    out = a[:, :, :cur_c, :S].reshape(N, D, cur_c, Hp, Wp)
    out = out[:, :, :, 1:H + 1, 1:W + 1]
    return jnp.transpose(out, (0, 2, 1, 3, 4)).astype(jnp.float32)


def _reference_forward(x_ncdhw, params):
    """Pure-JAX f32 reference (lax conv) for the correctness check."""
    x = x_ncdhw
    for w, b in params:
        y = lax.conv_general_dilated(
            x, w, window_strides=(1, 1, 1),
            padding=((1, 1), (1, 1), (1, 1)),
            dimension_numbers=("NCDHW", "OIDHW", "NCDHW"))
        x = jnp.maximum(y + b[None, :, None, None, None], 0.0)
    return x


if __name__ == "__main__":
    key = jax.random.PRNGKey(0)
    kx, kp = jax.random.split(key)

    # Small shapes consistent with a VNet ConvBlock: n_stages=2,
    # n_filters_in=4, n_filters_out=8, volume 8^3, batch 2 (NCDHW).
    N, Cin, Cout, D, H, W = 2, 4, 8, 8, 8, 8
    n_stages = 2

    x = jax.random.normal(kx, (N, Cin, D, H, W), jnp.float32)
    params = init_conv_block_params(kp, n_stages, Cin, Cout)

    out = jax.block_until_ready(conv_block_forward(x, params))
    assert out.shape == (N, Cout, D, H, W), out.shape

    ref = jax.block_until_ready(_reference_forward(x, params))
    max_err = float(jnp.max(jnp.abs(out - ref)))
    # bf16 activations/weights with f32 accumulation over 2 stages.
    assert jnp.allclose(out, ref, atol=5e-2, rtol=5e-2), max_err

    print("KERNEL_OK")
</pallas_src>

<mosaic_0001>
module attributes {stable_mosaic.version = 11 : i64} {
  func.func @kernel(%arg0: i32, %arg1: i32, %arg2: memref<1x1x8x128xbf16, #tpu.memory_space<vmem>>, %arg3: memref<27x8x24xbf16, #tpu.memory_space<vmem>>, %arg4: memref<8x1xf32, #tpu.memory_space<vmem>>, %arg5: memref<1x128xf32, #tpu.memory_space<vmem>>, %arg6: memref<1x1x8x128xbf16, #tpu.memory_space<vmem>>, %arg7: memref<24x384xbf16, #tpu.memory_space<vmem>>) attributes {dimension_semantics = [#tpu.dimension_semantics<parallel>, #tpu.dimension_semantics<arbitrary>], iteration_bounds = array<i64: 2, 9>, scalar_prefetch = 0 : i64, scratch_operands = 1 : i64, tpu.core_type = #tpu.core_type<tc>, window_params = [{transform_indices = @transform_0, window_bounds = array<i64: 1, 1, 8, 128>}, {pipeline_mode = #tpu.pipeline_mode<synchronous>, transform_indices = @transform_1, window_bounds = array<i64: 27, 8, 24>}, {pipeline_mode = #tpu.pipeline_mode<synchronous>, transform_indices = @transform_2, window_bounds = array<i64: 8, 1>}, {pipeline_mode = #tpu.pipeline_mode<synchronous>, transform_indices = @transform_3, window_bounds = array<i64: 1, 128>}, {transform_indices = @transform_4, window_bounds = array<i64: 1, 1, 8, 128>}]} {
    %c3_i32 = arith.constant 3 : i32
    %c0_i32 = arith.constant 0 : i32
    %0 = arith.cmpi eq, %c3_i32, %c0_i32 : i32
    %c1_i32 = arith.constant 1 : i32
    %1 = arith.select %0, %c1_i32, %c3_i32 : i32
    %2 = arith.remsi %arg1, %1 : i32
    %c0_i32_0 = arith.constant 0 : i32
    %3 = arith.cmpi ne, %2, %c0_i32_0 : i32
    %c0_i32_1 = arith.constant 0 : i32
    %4 = arith.cmpi slt, %2, %c0_i32_1 : i32
    %c0_i32_2 = arith.constant 0 : i32
    %5 = arith.cmpi slt, %1, %c0_i32_2 : i32
    %6 = arith.xori %4, %5 : i1
    %7 = arith.andi %6, %3 : i1
    %8 = arith.addi %2, %1 : i32
    %9 = arith.select %7, %8, %2 : i32
    %c8_i32 = arith.constant 8 : i32
    %10 = arith.muli %9, %c8_i32 : i32
    %11 = tpu.assume_multiple %10, 8 : i32
    %c0_i32_3 = arith.constant 0 : i32
    %12 = arith.cmpi eq, %arg1, %c0_i32_3 : i32
    %13 = arith.extui %12 : i1 to i32
    %c0_i32_4 = arith.constant 0 : i32
    %14 = arith.cmpi ne, %13, %c0_i32_4 : i32
    scf.if %14 {
      %cst = arith.constant 0.000000e+00 : bf16
      %24 = vector.broadcast %cst : bf16 to vector<24x128xbf16>
      %c0 = arith.constant 0 : index
      %c0_11 = arith.constant 0 : index
      %25 = vector.load %arg7[%c0, %c0_11] : memref<24x384xbf16, #tpu.memory_space<vmem>>, vector<24x128xbf16>
      tpu.vector_store %arg7[%c0, %c0_11], %24 {strides = array<i32>} : memref<24x384xbf16, #tpu.memory_space<vmem>>, vector<24x128xbf16>,
      %cst_12 = arith.constant 0.000000e+00 : bf16
      %26 = vector.broadcast %cst_12 : bf16 to vector<24x128xbf16>
      %c0_13 = arith.constant 0 : index
      %c256 = arith.constant 256 : index
      %27 = vector.load %arg7[%c0_13, %c256] : memref<24x384xbf16, #tpu.memory_space<vmem>>, vector<24x128xbf16>
      tpu.vector_store %arg7[%c0_13, %c256], %26 {strides = array<i32>} : memref<24x384xbf16, #tpu.memory_space<vmem>>, vector<24x128xbf16>,
      %cst_14 = arith.constant 0.000000e+00 : bf16
      %28 = vector.broadcast %cst_14 : bf16 to vector<8x128xbf16>
      %c16 = arith.constant 16 : index
      %c128 = arith.constant 128 : index
      %29 = vector.load %arg7[%c16, %c128] : memref<24x384xbf16, #tpu.memory_space<vmem>>, vector<8x128xbf16>
      tpu.vector_store %arg7[%c16, %c128], %28 {strides = array<i32>} : memref<24x384xbf16, #tpu.memory_space<vmem>>, vector<8x128xbf16>,
    } else {
    }
    %c8_i32_5 = arith.constant 8 : i32
    %15 = arith.cmpi slt, %arg1, %c8_i32_5 : i32
    %16 = arith.extui %15 : i1 to i32
    %c0_i32_6 = arith.constant 0 : i32
    %17 = arith.cmpi ne, %16, %c0_i32_6 : i32
    scf.if %17 {
      %c0 = arith.constant 0 : index
      %c0_11 = arith.constant 0 : index
      %c0_12 = arith.constant 0 : index
      %c0_13 = arith.constant 0 : index
      %24 = vector.load %arg2[%c0, %c0_11, %c0_12, %c0_13] : memref<1x1x8x128xbf16, #tpu.memory_space<vmem>>, vector<1x1x8x128xbf16>
      %25 = vector.shape_cast %24 : vector<1x1x8x128xbf16> to vector<8x128xbf16>
      %26 = arith.index_cast %11 : i32 to index
      %c128 = arith.constant 128 : index
      %27 = vector.load %arg7[%26, %c128] : memref<24x384xbf16, #tpu.memory_space<vmem>>, vector<8x128xbf16>
      tpu.vector_store %arg7[%26, %c128], %25 {strides = array<i32>} : memref<24x384xbf16, #tpu.memory_space<vmem>>, vector<8x128xbf16>,
    } else {
    }
    %c8_i32_7 = arith.constant 8 : i32
    %18 = arith.cmpi eq, %arg1, %c8_i32_7 : i32
    %19 = arith.extui %18 : i1 to i32
    %c0_i32_8 = arith.constant 0 : i32
    %20 = arith.cmpi ne, %19, %c0_i32_8 : i32
    scf.if %20 {
      %cst = arith.constant 0.000000e+00 : bf16
      %24 = vector.broadcast %cst : bf16 to vector<8x128xbf16>
      %25 = arith.index_cast %11 : i32 to index
      %c128 = arith.constant 128 : index
      %26 = vector.load %arg7[%25, %c128] : memref<24x384xbf16, #tpu.memory_space<vmem>>, vector<8x128xbf16>
      tpu.vector_store %arg7[%25, %c128], %24 {strides = array<i32>} : memref<24x384xbf16, #tpu.memory_space<vmem>>, vector<8x128xbf16>,
    } else {
    }
    %c0_i32_9 = arith.constant 0 : i32
    %21 = arith.cmpi sgt, %arg1, %c0_i32_9 : i32
    %22 = arith.extui %21 : i1 to i32
    %c0_i32_10 = arith.constant 0 : i32
    %23 = arith.cmpi ne, %22, %c0_i32_10 : i32
    scf.if %23 {
      %c3_i32_11 = arith.constant 3 : i32
      %c0_i32_12 = arith.constant 0 : i32
      %24 = arith.cmpi eq, %c3_i32_11, %c0_i32_12 : i32
      %c1_i32_13 = arith.constant 1 : i32
      %25 = arith.select %24, %c1_i32_13, %c3_i32_11 : i32
      %26 = arith.remsi %arg1, %25 : i32
      %c0_i32_14 = arith.constant 0 : i32
      %27 = arith.cmpi ne, %26, %c0_i32_14 : i32
      %c0_i32_15 = arith.constant 0 : i32
      %28 = arith.cmpi slt, %26, %c0_i32_15 : i32
      %c0_i32_16 = arith.constant 0 : i32
      %29 = arith.cmpi slt, %25, %c0_i32_16 : i32
      %30 = arith.xori %28, %29 : i1
      %31 = arith.andi %30, %27 : i1
      %32 = arith.addi %26, %25 : i32
      %33 = arith.select %31, %32, %26 : i32
      %c0 = arith.constant 0 : index
      %c117 = arith.constant 117 : index
      %34 = vector.load %arg7[%c0, %c117] : memref<24x384xbf16, #tpu.memory_space<vmem>>, vector<24x128xbf16>
      %c9_i32 = arith.constant 9 : i32
      %35 = arith.muli %33, %c9_i32 : i32
      %c0_i32_17 = arith.constant 0 : i32
      %36 = arith.addi %35, %c0_i32_17 : i32
      %37 = arith.index_cast %36 : i32 to index
      %c0_18 = arith.constant 0 : index
      %c0_19 = arith.constant 0 : index
      %38 = vector.load %arg3[%37, %c0_18, %c0_19] : memref<27x8x24xbf16, #tpu.memory_space<vmem>>, vector<1x8x24xbf16>
      %39 = vector.shape_cast %38 : vector<1x8x24xbf16> to vector<8x24xbf16>
      %cst = arith.constant dense<0.000000e+00> : vector<8x128xf32>
      %40 = tpu.matmul %39, %34, %cst {dimension_numbers = #tpu.dot_dimension_numbers<[1], [0], [0], [1], [0, 0, 1, 1], [], []>} : vector<8x24xbf16>, vector<24x128xbf16>, vector<8x128xf32> -> vector<8x128xf32>
      %c0_20 = arith.constant 0 : index
      %c118 = arith.constant 118 : index
      %41 = vector.load %arg7[%c0_20, %c118] : memref<24x384xbf16, #tpu.memory_space<vmem>>, vector<24x128xbf16>
      %c9_i32_21 = arith.constant 9 : i32
      %42 = arith.muli %33, %c9_i32_21 : i32
      %c1_i32_22 = arith.constant 1 : i32
      %43 = arith.addi %42, %c1_i32_22 : i32
      %44 = arith.index_cast %43 : i32 to index
      %c0_23 = arith.constant 0 : index
      %c0_24 = arith.constant 0 : index
      %45 = vector.load %arg3[%44, %c0_23, %c0_24] : memref<27x8x24xbf16, #tpu.memory_space<vmem>>, vector<1x8x24xbf16>
      %46 = vector.shape_cast %45 : vector<1x8x24xbf16> to vector<8x24xbf16>
      %cst_25 = arith.constant dense<0.000000e+00> : vector<8x128xf32>
      %47 = tpu.matmul %46, %41, %cst_25 {dimension_numbers = #tpu.dot_dimension_numbers<[1], [0], [0], [1], [0, 0, 1, 1], [], []>} : vector<8x24xbf16>, vector<24x128xbf16>, vector<8x128xf32> -> vector<8x128xf32>
      %48 = arith.addf %40, %47 : vector<8x128xf32>
      %c0_26 = arith.constant 0 : index
      %c119 = arith.constant 119 : index
      %49 = vector.load %arg7[%c0_26, %c119] : memref<24x384xbf16, #tpu.memory_space<vmem>>, vector<24x128xbf16>
      %c9_i32_27 = arith.constant 9 : i32
      %50 = arith.muli %33, %c9_i32_27 : i32
      %c2_i32 = arith.constant 2 : i32
      %51 = arith.addi %50, %c2_i32 : i32
      %52 = arith.index_cast %51 : i32 to index
      %c0_28 = arith.constant 0 : index
      %c0_29 = arith.constant 0 : index
      %53 = vector.load %arg3[%52, %c0_28, %c0_29] : memref<27x8x24xbf16, #tpu.memory_space<vmem>>, vector<1x8x24xbf16>
      %54 = vector.shape_cast %53 : vector<1x8x24xbf16> to vector<8x24xbf16>
      %cst_30 = arith.constant dense<0.000000e+00> : vector<8x128xf32>
      %55 = tpu.matmul %54, %49, %cst_30 {dimension_numbers = #tpu.dot_dimension_numbers<[1], [0], [0], [1], [0, 0, 1, 1], [], []>} : vector<8x24xbf16>, vector<24x128xbf16>, vector<8x128xf32> -> vector<8x128xf32>
      %56 = arith.addf %48, %55 : vector<8x128xf32>
      %c0_31 = arith.constant 0 : index
      %c127 = arith.constant 127 : index
      %57 = vector.load %arg7[%c0_31, %c127] : memref<24x384xbf16, #tpu.memory_space<vmem>>, vector<24x128xbf16>
      %c9_i32_32 = arith.constant 9 : i32
      %58 = arith.muli %33, %c9_i32_32 : i32
      %c3_i32_33 = arith.constant 3 : i32
      %59 = arith.addi %58, %c3_i32_33 : i32
      %60 = arith.index_cast %59 : i32 to index
      %c0_34 = arith.constant 0 : index
      %c0_35 = arith.constant 0 : index
      %61 = vector.load %arg3[%60, %c0_34, %c0_35] : memref<27x8x24xbf16, #tpu.memory_space<vmem>>, vector<1x8x24xbf16>
      %62 = vector.shape_cast %61 : vector<1x8x24xbf16> to vector<8x24xbf16>
      %cst_36 = arith.constant dense<0.000000e+00> : vector<8x128xf32>
      %63 = tpu.matmul %62, %57, %cst_36 {dimension_numbers = #tpu.dot_dimension_numbers<[1], [0], [0], [1], [0, 0, 1, 1], [], []>} : vector<8x24xbf16>, vector<24x128xbf16>, vector<8x128xf32> -> vector<8x128xf32>
      %64 = arith.addf %56, %63 : vector<8x128xf32>
      %c0_37 = arith.constant 0 : index
      %c128 = arith.constant 128 : index
      %65 = vector.load %arg7[%c0_37, %c128] : memref<24x384xbf16, #tpu.memory_space<vmem>>, vector<24x128xbf16>
      %c9_i32_38 = arith.constant 9 : i32
      %66 = arith.muli %33, %c9_i32_38 : i32
      %c4_i32 = arith.constant 4 : i32
      %67 = arith.addi %66, %c4_i32 : i32
      %68 = arith.index_cast %67 : i32 to index
      %c0_39 = arith.constant 0 : index
      %c0_40 = arith.constant 0 : index
      %69 = vector.load %arg3[%68, %c0_39, %c0_40] : memref<27x8x24xbf16, #tpu.memory_space<vmem>>, vector<1x8x24xbf16>
      %70 = vector.shape_cast %69 : vector<1x8x24xbf16> to vector<8x24xbf16>
      %cst_41 = arith.constant dense<0.000000e+00> : vector<8x128xf32>
      %71 = tpu.matmul %70, %65, %cst_41 {dimension_numbers = #tpu.dot_dimension_numbers<[1], [0], [0], [1], [0, 0, 1, 1], [], []>} : vector<8x24xbf16>, vector<24x128xbf16>, vector<8x128xf32> -> vector<8x128xf32>
      %72 = arith.addf %64, %71 : vector<8x128xf32>
      %c0_42 = arith.constant 0 : index
      %c129 = arith.constant 129 : index
      %73 = vector.load %arg7[%c0_42, %c129] : memref<24x384xbf16, #tpu.memory_space<vmem>>, vector<24x128xbf16>
      %c9_i32_43 = arith.constant 9 : i32
      %74 = arith.muli %33, %c9_i32_43 : i32
      %c5_i32 = arith.constant 5 : i32
      %75 = arith.addi %74, %c5_i32 : i32
      %76 = arith.index_cast %75 : i32 to index
      %c0_44 = arith.constant 0 : index
      %c0_45 = arith.constant 0 : index
      %77 = vector.load %arg3[%76, %c0_44, %c0_45] : memref<27x8x24xbf16, #tpu.memory_space<vmem>>, vector<1x8x24xbf16>
      %78 = vector.shape_cast %77 : vector<1x8x24xbf16> to vector<8x24xbf16>
      %cst_46 = arith.constant dense<0.000000e+00> : vector<8x128xf32>
      %79 = tpu.matmul %78, %73, %cst_46 {dimension_numbers = #tpu.dot_dimension_numbers<[1], [0], [0], [1], [0, 0, 1, 1], [], []>} : vector<8x24xbf16>, vector<24x128xbf16>, vector<8x128xf32> -> vector<8x128xf32>
      %80 = arith.addf %72, %79 : vector<8x128xf32>
      %c0_47 = arith.constant 0 : index
      %c137 = arith.constant 137 : index
      %81 = vector.load %arg7[%c0_47, %c137] : memref<24x384xbf16, #tpu.memory_space<vmem>>, vector<24x128xbf16>
      %c9_i32_48 = arith.constant 9 : i32
      %82 = arith.muli %33, %c9_i32_48 : i32
      %c6_i32 = arith.constant 6 : i32
      %83 = arith.addi %82, %c6_i32 : i32
      %84 = arith.index_cast %83 : i32 to index
      %c0_49 = arith.constant 0 : index
      %c0_50 = arith.constant 0 : index
      %85 = vector.load %arg3[%84, %c0_49, %c0_50] : memref<27x8x24xbf16, #tpu.memory_space<vmem>>, vector<1x8x24xbf16>
      %86 = vector.shape_cast %85 : vector<1x8x24xbf16> to vector<8x24xbf16>
      %cst_51 = arith.constant dense<0.000000e+00> : vector<8x128xf32>
      %87 = tpu.matmul %86, %81, %cst_51 {dimension_numbers = #tpu.dot_dimension_numbers<[1], [0], [0], [1], [0, 0, 1, 1], [], []>} : vector<8x24xbf16>, vector<24x128xbf16>, vector<8x128xf32> -> vector<8x128xf32>
      %88 = arith.addf %80, %87 : vector<8x128xf32>
      %c0_52 = arith.constant 0 : index
      %c138 = arith.constant 138 : index
      %89 = vector.load %arg7[%c0_52, %c138] : memref<24x384xbf16, #tpu.memory_space<vmem>>, vector<24x128xbf16>
      %c9_i32_53 = arith.constant 9 : i32
      %90 = arith.muli %33, %c9_i32_53 : i32
      %c7_i32 = arith.constant 7 : i32
      %91 = arith.addi %90, %c7_i32 : i32
      %92 = arith.index_cast %91 : i32 to index
      %c0_54 = arith.constant 0 : index
      %c0_55 = arith.constant 0 : index
      %93 = vector.load %arg3[%92, %c0_54, %c0_55] : memref<27x8x24xbf16, #tpu.memory_space<vmem>>, vector<1x8x24xbf16>
      %94 = vector.shape_cast %93 : vector<1x8x24xbf16> to vector<8x24xbf16>
      %cst_56 = arith.constant dense<0.000000e+00> : vector<8x128xf32>
      %95 = tpu.matmul %94, %89, %cst_56 {dimension_numbers = #tpu.dot_dimension_numbers<[1], [0], [0], [1], [0, 0, 1, 1], [], []>} : vector<8x24xbf16>, vector<24x128xbf16>, vector<8x128xf32> -> vector<8x128xf32>
      %96 = arith.addf %88, %95 : vector<8x128xf32>
      %c0_57 = arith.constant 0 : index
      %c139 = arith.constant 139 : index
      %97 = vector.load %arg7[%c0_57, %c139] : memref<24x384xbf16, #tpu.memory_space<vmem>>, vector<24x128xbf16>
      %c9_i32_58 = arith.constant 9 : i32
      %98 = arith.muli %33, %c9_i32_58 : i32
      %c8_i32_59 = arith.constant 8 : i32
      %99 = arith.addi %98, %c8_i32_59 : i32
      %100 = arith.index_cast %99 : i32 to index
      %c0_60 = arith.constant 0 : index
      %c0_61 = arith.constant 0 : index
      %101 = vector.load %arg3[%100, %c0_60, %c0_61] : memref<27x8x24xbf16, #tpu.memory_space<vmem>>, vector<1x8x24xbf16>
      %102 = vector.shape_cast %101 : vector<1x8x24xbf16> to vector<8x24xbf16>
      %cst_62 = arith.constant dense<0.000000e+00> : vector<8x128xf32>
      %103 = tpu.matmul %102, %97, %cst_62 {dimension_numbers = #tpu.dot_dimension_numbers<[1], [0], [0], [1], [0, 0, 1, 1], [], []>} : vector<8x24xbf16>, vector<24x128xbf16>, vector<8x128xf32> -> vector<8x128xf32>
      %104 = arith.addf %96, %103 : vector<8x128xf32>
      %c0_63 = arith.constant 0 : index
      %c0_64 = arith.constant 0 : index
      %105 = vector.load %arg4[%c0_63, %c0_64] : memref<8x1xf32, #tpu.memory_space<vmem>>, vector<8x1xf32>
      %106 = vector.broadcast %105 : vector<8x1xf32> to vector<8x128xf32>
      %107 = arith.addf %104, %106 : vector<8x128xf32>
      %cst_65 = arith.constant 0.000000e+00 : f32
      %108 = vector.broadcast %cst_65 : f32 to vector<8x128xf32>
      %109 = arith.maximumf %107, %108 : vector<8x128xf32>
      %c0_66 = arith.constant 0 : index
      %c0_67 = arith.constant 0 : index
      %110 = vector.load %arg5[%c0_66, %c0_67] : memref<1x128xf32, #tpu.memory_space<vmem>>, vector<1x128xf32>
      %cst_68 = arith.constant 0.000000e+00 : f32
      %111 = vector.broadcast %cst_68 : f32 to vector<1x128xf32>
      %112 = arith.cmpf ogt, %110, %111 : vector<1x128xf32>
      %cst_69 = arith.constant 0.000000e+00 : f32
      %113 = vector.shape_cast %112 : vector<1x128xi1> to vector<1x128xi1>
      %114 = vector.broadcast %113 : vector<1x128xi1> to vector<8x128xi1>
      %115 = vector.broadcast %cst_69 : f32 to vector<8x128xf32>
      %116 = arith.select %114, %109, %115 : vector<8x128xi1>, vector<8x128xf32>
      %117 = arith.truncf %116 : vector<8x128xf32> to vector<8x128xbf16>
      %c0_70 = arith.constant 0 : index
      %c0_71 = arith.constant 0 : index
      %c0_72 = arith.constant 0 : index
      %c0_73 = arith.constant 0 : index
      %118 = vector.load %arg6[%c0_70, %c0_71, %c0_72, %c0_73] : memref<1x1x8x128xbf16, #tpu.memory_space<vmem>>, vector<1x1x8x128xbf16>
      %119 = vector.shape_cast %118 : vector<1x1x8x128xbf16> to vector<8x128xbf16>
      %120 = vector.shape_cast %117 : vector<8x128xbf16> to vector<1x1x8x128xbf16>
      tpu.vector_store %arg6[%c0_70, %c0_71, %c0_72, %c0_73], %120 {strides = array<i32>} : memref<1x1x8x128xbf16, #tpu.memory_space<vmem>>, vector<1x1x8x128xbf16>,
    } else {
    }
    return
  }
  func.func @transform_0(%arg0: i32, %arg1: i32) -> (i32, i32, i32, i32) {
    %c7_i32 = arith.constant 7 : i32
    %0 = arith.minsi %arg1, %c7_i32 : i32
    %c0_i32 = arith.constant 0 : i32
    %c0_i32_0 = arith.constant 0 : i32
    %c0_i32_1 = arith.constant 0 : i32
    return %arg0, %0, %c0_i32, %c0_i32_0 : i32, i32, i32, i32
  }
  func.func @transform_1(%arg0: i32, %arg1: i32) -> (i32, i32, i32) {
    %c0_i32 = arith.constant 0 : i32
    %c0_i32_0 = arith.constant 0 : i32
    %c0_i32_1 = arith.constant 0 : i32
    %c0_i32_2 = arith.constant 0 : i32
    return %c0_i32, %c0_i32_0, %c0_i32_1 : i32, i32, i32
  }
  func.func @transform_2(%arg0: i32, %arg1: i32) -> (i32, i32) {
    %c0_i32 = arith.constant 0 : i32
    %c0_i32_0 = arith.constant 0 : i32
    %c0_i32_1 = arith.constant 0 : i32
    return %c0_i32, %c0_i32_0 : i32, i32
  }
  func.func @transform_3(%arg0: i32, %arg1: i32) -> (i32, i32) {
    %c0_i32 = arith.constant 0 : i32
    %c0_i32_0 = arith.constant 0 : i32
    %c0_i32_1 = arith.constant 0 : i32
    return %c0_i32, %c0_i32_0 : i32, i32
  }
  func.func @transform_4(%arg0: i32, %arg1: i32) -> (i32, i32, i32, i32) {
    %c1_i32 = arith.constant 1 : i32
    %0 = arith.subi %arg1, %c1_i32 : i32
    %c0_i32 = arith.constant 0 : i32
    %1 = arith.maxsi %0, %c0_i32 : i32
    %c0_i32_0 = arith.constant 0 : i32
    %c0_i32_1 = arith.constant 0 : i32
    %c0_i32_2 = arith.constant 0 : i32
    return %arg0, %1, %c0_i32_0, %c0_i32_1 : i32, i32, i32, i32
  }
}

</mosaic_0001>

<bundles_post_ra>
// kernel: conv_block_forward.2
= control target key start
LH: loop header
LB: loop body
LE: loop exit
PB: predicated region body
PF: predicated region fallthrough
CT: control target
= control target key end

     0   :  { %s1036_s15 = smov 0   ;;  %s1038_s16 = smov 0   ;;  %s1159_s0 = inlined_call_operand.vmem [shape: bf16[2,8,8,128], index: 0, kind: input, shape index: {}]   ;;  %s1160_s1 = inlined_call_operand.vmem [shape: bf16[27,8,24], index: 1, kind: input, shape index: {}]   ;;  %s1161_s2 = inlined_call_operand.vmem [shape: f32[8,1], index: 2, kind: input, shape index: {}]   ;;  %s1162_s3 = inlined_call_operand.vmem [shape: f32[1,128], index: 3, kind: input, shape index: {}]   ;;  %s1163_s4 = inlined_call_operand.vmem [shape: bf16[2,8,8,128], index: 4, kind: output, shape index: {}]  }
   0x1   :  { %s1040_s17 = smov 0   ;;  %s1042_s18 = smov 0  }
   0x2   :  { %s1044_s19 = smov 0  }
   0x3 LB: > { %s23_s20 = sadd.s32 1, %s990_s17  ;;  %s26_s21 = sadd.s32 1, %s994_s18  ;;  %s998_s19 = sphi %s1044_s19, %s14_s19   ;;  %s994_s18 = sphi %s1042_s18, %s1167_s18   ;;  %s990_s17 = sphi %s1040_s17, %s1166_s17   ;;  %s986_s16 = sphi %s1038_s16, %s1165_s16   ;;  %s982_s15 = sphi %s1036_s15, %s1164_s15  }
   0x4   : > { %p24_p0 = scmp.ge.s32.totalorder %s23_s20, 9  ;;  %p821_p1 = scmp.ge.s32.totalorder %s998_s19, 1 }
   0x5   : > { %p195_p2 = scmp.lt.s32.totalorder %s998_s19, 19 }
   0x6   : > { %s1169_s20 = smov (%p24_p0, %s23_s20), 0  ;;  %s1171_s21 = smov (!%p24_p0, %s26_s21), %s994_s18 }
   0x7   : > { %p196_p3 = pnand %p821_p1, %p195_p2  ;;  %p28_p4 = scmp.ge.s32.totalorder %s1171_s21, 2 }
   0x8   : > { %p232_p5 = scmp.lt.s32.totalorder (!%p196_p3), %s982_s15, 7  ;;  %p234_p6 = scmp.lt.s32.totalorder (!%p196_p3), %s986_s16, 1 }
   0x9   : > { %s1173_s21 = smov (%p28_p4, %s1171_s21), 0  ;;  %199 = sbr.rel (%p196_p3) target bundleno = 403 (0x193), region = 36 }
   0xa   : > { %s827_s22 = sadd.s32 (!%p196_p3), 4294967295, %s982_s15  ;;  %s260_s27 = ssub.s32 (!%p196_p3), 0, %s982_s15 }
   0xb   : > { %p245_p7 = scmp.gt.s32.totalorder (!%p196_p3), %s827_s22, 0  ;;  %p828_p8 = scmp.lt.s32.totalorder (!%p196_p3), %s827_s22, 7 }
   0xc   : > { %s835_s5 = smin.u32 (!%p196_p3), %s982_s15, %s260_s27  ;;  %p259_p9 = scmp.lt.s32.totalorder (!%p196_p3), %s982_s15, 0 }
   0xd   : > { %955 = sdivrem.u32 (!%p196_p3), %s835_s5, 3  ;;  %p839_p11 = scmp.ne.s32.totalorder (!%p196_p3), %s982_s15, 0 }
   0xe   : > { %s233_s23 = scalar_select %p232_p5, %s982_s15, 7 }
   0xf   : > { %s1175_s16 = smov (!%p234_p6, %s986_s16), 1  ;;  %s1179_s22 = smov (!%p245_p7, %s827_s22), 0 }
  0x10   : > { %s1177_s23 = smov (!%p232_p5, %s233_s23), 7  ;;  %s825_s24 = sshll.u32 %s1175_s16, 3 }
  0x11   : > { %s239_s25 = sadd.s32 %s825_s24, %s1177_s23  ;;  %s1181_s22 = smov (!%p828_p8, %s1179_s22), 7 }
  0x12   : > { %s826_s26 = sshll.u32 %s239_s25, 2  ;;  %s252_s6 = sadd.s32 %s1181_s22, %s825_s24 }
  0x13   : > { %s1075_s30 = scalar_lea.vmem %s1159_s0, %s826_s26  ;;  %s834_s7 = sshll.u32 %s252_s6, 2 }
  0x14   : > { %s1081_s10 = scalar_lea.vmem %s1163_s4, %s834_s7 }
  0x16   : > { %s956_s11 = spop.drf %955 }
  0x17   : > { %s957_s12 = spop.drf %955 }
  0x18   : > { %s264_s13 = ssub.s32 0, %s957_s12 }
  0x19   : > { %s1183_s13 = smov (!%p259_p9, %s264_s13), %s957_s12  ;;  %276 = sbr.rel (%p839_p11) target bundleno = 38 (0x26), region = 40 }
  0x1a   : > { %p837_p10 = scmp.lt.s32.totalorder %s1183_s13, 0  ;;  %s270_s14 = sadd.s32 3, %s1183_s13 }
  0x1c   : > { %s1185_s14 = smov (!%p837_p10, %s270_s14), %s1183_s13 }
  0x1d   : > { %s838_s16 = sshll.u32 %s1185_s14, 3 }
  0x1e   : > { %v1000_v0 = vmov 0  }
  0x1f   : > { %277 = vst [vmem:[#allocation2] sm:$0xf] %v1000_v0 }
  0x20   : > { %278 = vst [vmem:[#allocation2 + $0xc] sm:$0xf] %v1000_v0 }
  0x21   : > { %279 = vst [vmem:[#allocation2 + $0x18] sm:$0xf] %v1000_v0 }
  0x22   : > { %280 = vst [vmem:[#allocation2 + $0x8] sm:$0xf] %v1000_v0 }
  0x23   : > { %281 = vst [vmem:[#allocation2 + $0x14] sm:$0xf] %v1000_v0 }
  0x24   : > { %282 = vst [vmem:[#allocation2 + $0x20] sm:$0xf] %v1000_v0 }
  0x25   : > { %283 = vst [vmem:[#allocation2 + $0x1c] sm:$0xf] %v1000_v0 }
  0x26 PF: > { %p840_p12 = scmp.ge.s32.totalorder %s982_s15, 8 }
  0x27   : > { %s289_s22 = sshra.s32 (!%p840_p12), %s838_s16, 3 }
  0x28   : > { %287 = sbr.rel (%p840_p12) target bundleno = 47 (0x2f), region = 44 }
  0x29   : > { %s895_s23 = smul.u32 (!%p840_p12), 12, %s289_s22 }
  0x2b   : > { %s293_s24 = scalar_lea.vmem (!%p840_p12), [#allocation2], %s895_s23 }
  0x2d   : > { %v288_v1 = vld [vmem:[%s1075_s30] sm:$0xf] }
  0x2e   : > { %294 = vst [vmem:[%s293_s24 + $0x4] sm:$0xf] %v288_v1 }
  0x2f PF: > { %p842_p13 = scmp.ne.s32.totalorder %s982_s15, 8 }
  0x30   : > { %s299_s25 = sshra.s32 (!%p842_p13), %s838_s16, 3 }
  0x31   : > { %298 = sbr.rel (%p842_p13) target bundleno = 56 (0x38), region = 48 }
  0x32   : > { %s896_s26 = smul.u32 (!%p842_p13), 12, %s299_s25 }
  0x34   : > { %s303_s27 = scalar_lea.vmem (!%p842_p13), [#allocation2], %s896_s26 }
  0x36   : > { %v1001_v2 = vmov 0  }
  0x37   : > { %304 = vst [vmem:[%s303_s27 + $0x4] sm:$0xf] %v1001_v2 }
  0x38 PF: > { %p844_p0 = scmp.le.s32.totalorder %s982_s15, 0 }
  0x39   : > { %s1002_s28 = smov (!%p844_p0), 10   ;;  %s1003_s29 = smov (!%p844_p0), 9  }
  0x3a   : > { %308 = sbr.rel (%p844_p0) target bundleno = 403 (0x193), region = 52  ;;  %s1004_s15 = smov (!%p844_p0), 1  }
  0x3b   : > { %s1005_s30 = smov (!%p844_p0), 11   ;;  %s1006_s5 = smov (!%p844_p0), 119  }
  0x3c   : > { %s1007_s6 = smov (!%p844_p0), 118   ;;  %s1008_s7 = smov (!%p844_p0), 127  }
  0x3d   : > { %s1009_s8 = smov (!%p844_p0), 117   ;;  %s899_s9 = smul.u32 (!%p844_p0), 36, %s1185_s14 }
  0x3f   : > { %v850_v3 = vld [vmem:[#allocation2] sm:$0xf]  ;;  %v898_v4 = vld [vmem:[#allocation2 + $0x8] sm:$0xf0]  ;;  %v311_v5 = vld [vmem:[#allocation2 + $0x18] sm:$0xff]  ;;  %vm409_vm0 = vcmask 72704   ;;  %s1099_s13 = scalar_lea.vmem %s1160_s1, %s899_s9 }
  0x40   : > { %v851_v6 = vor.u32 %v898_v4, %v850_v3  ;;  %v327_v7 = vunpack.c.l.b16 %v311_v5  ;;  %v897_v9 = vld [vmem:[#allocation2 + $0x4] sm:$0xf]  ;;  %v852_v10 = vld [vmem:[#allocation2 + $0xc] sm:$0xf0]  ;;  %v328_v11 = vunpack.c.h.b16 %v311_v5  ;;  %v507_v14 = vld [vmem:[#allocation2 + $0x1c] sm:$0xff]  ;;  %vm349_vm1 = vcmask 1043456  }
  0x41   : > { %v855_v12 = vor.u32 %v897_v9, %v852_v10  ;;  %v519_v15 = vunpack.c.l.b16 %v507_v14  ;;  %v520_v17 = vunpack.c.h.b16 %v507_v14  ;;  %v875_v19 = vld [vmem:[#allocation2 + $0x4] sm:$0xf]  ;;  %v902_v20 = vld [vmem:[#allocation2 + $0xc] sm:$0xf0]  ;;  %v901_v22 = vld [vmem:[#allocation2 + $0x8] sm:$0xf] }
  0x42   : > { %333 = vrot.lane.b32.xlu1 %v851_v6, %s1002_s28  ;;  %v331_v8 = vpack.c.b16 %v327_v7, %v327_v7  ;;  %v332_v13 = vpack.c.b16 %v328_v11, %v328_v11  ;;  %v876_v21 = vor.u32 %v902_v20, %v875_v19  ;;  %v877_v23 = vld [vmem:[#allocation2 + $0x10] sm:$0xf0]  ;;  %vm341_vm2 = vcmask 80896   ;;  %v471_v39 = vld [vmem:[#allocation2 + $0x1c] sm:$0xf]  ;;  %v665_v11 = vld [vmem:[%s1161_s2] sm:$0xff] }
  0x43   : > { %v523_v16 = vpack.c.b16 %v519_v15, %v519_v15  ;;  %v524_v18 = vpack.c.b16 %v520_v17, %v520_v17  ;;  %v880_v24 = vor.u32 %v901_v22, %v877_v23  ;;  %vm445_vm3 = vcmask 7168   ;;  %v847_v40 = vld [vmem:[%s1099_s13 + $0x4] sm:$0xf]  ;;  %v900_v49 = vld [vmem:[#allocation2 + $0xc] sm:$0xf0] }
  0x44   : > { %337 = vrot.lane.b32.xlu0 %v331_v8, %s1002_s28  ;;  %405 = vrot.lane.b32.xlu2 %v331_v8, %s1003_s29  ;;  %vm345_vm4 = vcmask 195584   ;;  %v481_v41 = vunpack.c.l.b16 %v471_v39  ;;  %v868_v48 = vld [vmem:[#allocation2 + $0x4] sm:$0xf]  ;;  %vm374_vm5 = vcmask 89088   ;;  %v859_v54 = vld [vmem:[%s1099_s13 + $0x8] sm:$0xf] }
  0x45   : > { %v869_v51 = vor.u32 %v900_v49, %v868_v48  ;;  %v865_v59 = vld [vmem:[%s1099_s13 + $0x10] sm:$0xf]  ;;  %v862_v62 = vld [vmem:[%s1099_s13 + $0xc] sm:$0xf]  ;;  %vm569_vm6 = vcmask 973824   ;;  %vm605_vm7 = vcmask 965632  }
  0x46   : > { %v483_v44 = vpack.c.b16 %v481_v41, %v481_v41  ;;  %v315_v5 = vld [vmem:[%s1099_s13] sm:$0xf]  ;;  %vm533_vm8 = vcmask 1039360   ;;  %v886_v23 = vld [vmem:[%s1099_s13 + $0x1c] sm:$0xf]  ;;  %vm641_vm9 = vcmask 957440  }
  0x48   : > { %v489_v47 = vsel %vm349_vm1, %v483_v44, 0 }
  0x4a   : > { %335 = vrot.lane.b32.xlu1 %v855_v12, %s1002_s28 }
  0x4c   : > { %339 = vrot.lane.b32.xlu0 %v332_v13, %s1002_s28  ;;  %407 = vrot.lane.b32.xlu2 %v332_v13, %s1003_s29 }
  0x52   : > { %443 = vrot.lane.b32.xlu1 %v332_v13, %s1004_s15 }
  0x54   : > { %441 = vrot.lane.b32.xlu0 %v331_v8, %s1004_s15  ;;  %370 = vrot.lane.b32.xlu2 %v331_v8, %s1005_s30 }
  0x5a   : > { %401 = vrot.lane.b32.xlu1 %v851_v6, %s1003_s29 }
  0x5c   : > { %372 = vrot.lane.b32.xlu0 %v332_v13, %s1005_s30  ;;  %403 = vrot.lane.b32.xlu2 %v855_v12, %s1003_s29  ;;  %v1010_v13 = vmov 0  }
  0x5d   : > { %958 = vset.pattern.permute.xlu2 %v1010_v13  ;;  %959 = vset.pattern.permute.xlu0 %v1010_v13 }
  0x62   : > { %439 = vrot.lane.b32.xlu1 %v855_v12, %s1004_s15 }
  0x64   : > { %437 = vrot.lane.b32.xlu0 %v851_v6, %s1004_s15  ;;  %366 = vrot.lane.b32.xlu2 %v851_v6, %s1005_s30 }
  0x6a   : > { %565 = vrot.lane.b32.xlu1 %v523_v16, %s1006_s5 }
  0x6c   : > { %368 = vrot.lane.b32.xlu0 %v855_v12, %s1005_s30  ;;  %567 = vrot.lane.b32.xlu2 %v524_v18, %s1006_s5 }
  0x72   : > { %603 = vrot.lane.b32.xlu1 %v524_v18, %s1007_s6 }
  0x74   : > { %601 = vrot.lane.b32.xlu0 %v523_v16, %s1007_s6  ;;  %529 = vrot.lane.b32.xlu2 %v523_v16, %s1008_s7 }
  0x7a   : > { %561 = vrot.lane.b32.xlu1 %v876_v21, %s1006_s5 }
  0x7c   : > { %531 = vrot.lane.b32.xlu0 %v524_v18, %s1008_s7  ;;  %563 = vrot.lane.b32.xlu2 %v880_v24, %s1006_s5 }
  0x82   : > { %599 = vrot.lane.b32.xlu1 %v880_v24, %s1007_s6 }
  0x84   : > { %597 = vrot.lane.b32.xlu0 %v876_v21, %s1007_s6  ;;  %525 = vrot.lane.b32.xlu2 %v876_v21, %s1008_s7 }
  0x8a   : > { %637 = vrot.lane.b32.xlu1 %v523_v16, %s1009_s8  ;;  %v883_v16 = vld [vmem:[%s1099_s13 + $0x18] sm:$0xf] }
  0x8c   : > { %527 = vrot.lane.b32.xlu0 %v880_v24, %s1008_s7  ;;  %639 = vrot.lane.b32.xlu2 %v524_v18, %s1009_s8 }
  0x92   : > { %635 = vrot.lane.b32.xlu1 %v880_v24, %s1009_s8 }
  0x94   : > { %633 = vrot.lane.b32.xlu0 %v876_v21, %s1009_s8  ;;  %668 = vperm.xlu2 %958, %v665_v11  }
  0x9e   : > { %v406_v25 = vpop.permute.xlu2 %405 }
  0xa6   : > { %v408_v26 = vpop.permute.xlu2 %407 }
  0xa7   : > { %v411_v27 = vsel %vm409_vm0, %v406_v25, %v408_v26 }
  0xa8   : > { %v417_v28 = vsel %vm349_vm1, %v411_v27, 0 }
  0xa9   : > { %425 = vmatpush.bf16.msra.mxu2 %v417_v28 }
  0xae   : > { %v371_v30 = vpop.permute.xlu2 %370 }
  0xb4   : > { %v334_v29 = vpop.permute.xlu1 %333 }
  0xb6   : > { %v338_v31 = vpop.permute.xlu0 %337  ;;  %v404_v34 = vpop.permute.xlu2 %403 }
  0xbc   : > { %v336_v32 = vpop.permute.xlu1 %335 }
  0xbd   : > { %v342_v37 = vsel %vm341_vm2, %v334_v29, %v336_v32 }
  0xbe   : > { %v340_v33 = vpop.permute.xlu0 %339  ;;  %v367_v46 = vpop.permute.xlu2 %366 }
  0xbf   : > { %v343_v35 = vsel %vm341_vm2, %v338_v31, %v340_v33 }
  0xc0   : > { %v351_v36 = vsel %vm349_vm1, %v343_v35, 0 }
  0xc1   : > { %359 = vmatpush.bf16.msra.mxu0 %v351_v36 }
  0xc4   : > { %v444_v38 = vpop.permute.xlu1 %443 }
  0xc5   : > { %360 = vmatpush.bf16.msra.mxu0 %v342_v37 }
  0xc6   : > { %v442_v42 = vpop.permute.xlu0 %441  ;;  %v568_v57 = vpop.permute.xlu2 %567 }
  0xc7   : > { %v447_v43 = vsel %vm445_vm3, %v442_v42, %v444_v38 }
  0xc8   : > { %v453_v45 = vsel %vm349_vm1, %v447_v43, 0  ;;  %856 = vmatmul.msk.bf16.vlgmr.msra.gmra.mxu0 %vm345_vm4, %v847_v40 }
  0xc9   : > { %461 = vmatpush.bf16.msra.mxu3 %v453_v45  ;;  %497 = vmatpush.bf16.msrb.mxu0 %v489_v47 }
  0xcc   : > { %v402_v50 = vpop.permute.xlu1 %401 }
  0xcd   : > { %v410_v52 = vsel %vm409_vm0, %v402_v50, %v404_v34  ;;  %498 = vmatpush.bf16.msrb.mxu0 %v869_v51  ;;  %v889_v34 = vld [vmem:[%s1099_s13 + $0x20] sm:$0xf] }
  0xce   : > { %v373_v53 = vpop.permute.xlu0 %372  ;;  %426 = vmatpush.bf16.msra.mxu2 %v410_v52  ;;  %v530_v0 = vpop.permute.xlu2 %529  ;;  %v673_v51 = vld [vmem:[%s1162_s3] sm:$0x1] }
  0xcf   : > { %v376_v55 = vsel %vm374_vm5, %v371_v30, %v373_v53  ;;  %v872_v30 = vld [vmem:[%s1099_s13 + $0x14] sm:$0xf]  ;;  %vm674_vm10 = vcmp.gt.f32.partialorder %v673_v51, 0.0 }
  0xd0   : > { %v382_v56 = vsel %vm349_vm1, %v376_v55, 0 }
  0xd1   : > { %390 = vmatpush.bf16.msra.mxu1 %v382_v56  ;;  %860 = vmatmul.msk.bf16.vlgmr.msra.gmra.mxu2 %vm345_vm4, %v859_v54  ;;  %v675_v56 = vsel %vm674_vm10, 1, %v1010_v13 }
  0xd4   : > { %v440_v58 = vpop.permute.xlu1 %439 }
  0xd6   : > { %v438_v60 = vpop.permute.xlu0 %437  ;;  %v564_v8 = vpop.permute.xlu2 %563 }
  0xd7   : > { %v446_v61 = vsel %vm445_vm3, %v438_v60, %v440_v58  ;;  %v676_v60 = vperm.slane %v675_v56, 0 }
  0xd8   : > { %462 = vmatpush.bf16.msra.mxu3 %v446_v61  ;;  %870 = vmatmul.msk.bf16.vlgmr.msrb.gmra.mxu0 %vm345_vm4, %v865_v59 }
  0xd9   : > { %vm677_vm11 = vcmp.eq.s32.totalorder %v676_v60, 1 }
  0xdb   : > { %863 = vmatmul.msk.bf16.vlgmr.msra.gmra.mxu3 %vm345_vm4, %v862_v62 }
  0xdc   : > { %v566_v63 = vpop.permute.xlu1 %565 }
  0xdd   : > { %v571_v1 = vsel %vm569_vm6, %v566_v63, %v568_v57 }
  0xde   : > { %v369_v2 = vpop.permute.xlu0 %368  ;;  %v577_v3 = vsel %vm349_vm1, %v571_v1, 0  ;;  %v526_v19 = vpop.permute.xlu2 %525 }
  0xdf   : > { %v375_v4 = vsel %vm374_vm5, %v367_v46, %v369_v2  ;;  %585 = vmatpush.bf16.msrb.mxu2 %v577_v3 }
  0xe0   : > { %391 = vmatpush.bf16.msra.mxu1 %v375_v4 }
  0xe3   : > { %857 = vmatmul.msk.bf16.vlgmr.msra.gmra.mxu1 %vm345_vm4, %v315_v5 }
  0xe4   : > { %v604_v6 = vpop.permute.xlu1 %603 }
  0xe6   : > { %v602_v7 = vpop.permute.xlu0 %601  ;;  %v640_v24 = vpop.permute.xlu2 %639 }
  0xe7   : > { %v607_v9 = vsel %vm605_vm7, %v602_v7, %v604_v6 }
  0xe8   : > { %v613_v10 = vsel %vm349_vm1, %v607_v9, 0 }
  0xe9   : > { %621 = vmatpush.bf16.msrb.mxu3 %v613_v10 }
  0xec   : > { %v562_v12 = vpop.permute.xlu1 %561 }
  0xed   : > { %v570_v14 = vsel %vm569_vm6, %v562_v12, %v564_v8 }
  0xee   : > { %v532_v15 = vpop.permute.xlu0 %531  ;;  %586 = vmatpush.bf16.msrb.mxu2 %v570_v14  ;;  %v669_v59 = vpop.permute.xlu2 %668 }
  0xef   : > { %v535_v17 = vsel %vm533_vm8, %v530_v0, %v532_v15 }
  0xf0   : > { %v541_v18 = vsel %vm349_vm1, %v535_v17, 0 }
  0xf1   : > { %549 = vmatpush.bf16.msrb.mxu1 %v541_v18  ;;  %884 = vmatmul.msk.bf16.vlgmr.msrb.gmra.mxu2 %vm345_vm4, %v883_v16 }
  0xf4   : > { %v600_v20 = vpop.permute.xlu1 %599 }
  0xf6   : > { %v598_v21 = vpop.permute.xlu0 %597 }
  0xf7   : > { %v606_v22 = vsel %vm605_vm7, %v598_v21, %v600_v20 }
  0xf8   : > { %622 = vmatpush.bf16.msrb.mxu3 %v606_v22 }
  0xfb   : > { %887 = vmatmul.msk.bf16.vlgmr.msrb.gmra.mxu3 %vm345_vm4, %v886_v23 }
  0xfc   : > { %v638_v25 = vpop.permute.xlu1 %637 }
  0xfd   : > { %v643_v26 = vsel %vm641_vm9, %v638_v25, %v640_v24 }
  0xfe   : > { %v649_v27 = vsel %vm349_vm1, %v643_v26, 0  ;;  %v528_v28 = vpop.permute.xlu0 %527 }
  0xff   : > { %v534_v29 = vsel %vm533_vm8, %v526_v19, %v528_v28  ;;  %657 = vmatpush.bf16.msra.mxu0 %v649_v27 }
 0x100   : > { %550 = vmatpush.bf16.msrb.mxu1 %v534_v29 }
 0x103   : > { %881 = vmatmul.msk.bf16.vlgmr.msrb.gmra.mxu1 %vm345_vm4, %v872_v30 }
 0x104   : > { %v636_v31 = vpop.permute.xlu1 %635 }
 0x106   : > { %v634_v32 = vpop.permute.xlu0 %633 }
 0x107   : > { %v642_v33 = vsel %vm641_vm9, %v634_v32, %v636_v31 }
 0x108   : > { %658 = vmatpush.bf16.msra.mxu0 %v642_v33 }
 0x10b   : > { %890 = vmatmul.msk.bf16.vlgmr.msra.gmra.mxu0 %vm345_vm4, %v889_v34 }
 0x145   : > { %v362_v35 = vpop.f32.mrf.mxu0 }
 0x14d   : > { %v364_v36 = vpop.f32.mrf.mxu0 }
 0x154   : > { %v428_v37 = vpop.f32.mrf.mxu2 }
 0x155   : > { %v500_v38 = vpop.f32.mrf.mxu0 }
 0x15c   : > { %v430_v39 = vpop.f32.mrf.mxu2 }
 0x15d   : > { %v502_v40 = vpop.f32.mrf.mxu0 }
 0x15e   : > { %v464_v41 = vpop.f32.mrf.mxu3 }
 0x160   : > { %v393_v42 = vpop.f32.mrf.mxu1 }
 0x161   : > { %v394_v45 = vadd.f32 %v393_v42, %v362_v35 }
 0x163   : > { %v432_v47 = vadd.f32 %v428_v37, %v394_v45 }
 0x165   : > { %v468_v48 = vadd.f32 %v464_v41, %v432_v47 }
 0x166   : > { %v466_v43 = vpop.f32.mrf.mxu3 }
 0x167   : > { %v504_v52 = vadd.f32 %v500_v38, %v468_v48 }
 0x168   : > { %v395_v44 = vpop.f32.mrf.mxu1 }
 0x174   : > { %v588_v46 = vpop.f32.mrf.mxu2 }
 0x17c   : > { %v590_v49 = vpop.f32.mrf.mxu2 }
 0x17e   : > { %v624_v50 = vpop.f32.mrf.mxu3 }
 0x180   : > { %v552_v53 = vpop.f32.mrf.mxu1 }
 0x181   : > { %v556_v54 = vadd.f32 %v552_v53, %v504_v52 }
 0x183   : > { %v592_v55 = vadd.f32 %v588_v46, %v556_v54 }
 0x185   : > { %v628_v58 = vadd.f32 %v624_v50, %v592_v55 }
 0x186   : > { %v626_v57 = vpop.f32.mrf.mxu3 }
 0x188   : > { %v554_v61 = vpop.f32.mrf.mxu1  ;;  %v660_v62 = vpop.f32.mrf.mxu0 }
 0x189   : > { %v664_v63 = vadd.f32 %v660_v62, %v628_v58 }
 0x18b   : > { %v671_v0 = vadd.f32 %v669_v59, %v664_v63 }
 0x18d   : > { %v672_v1 = vmax.f32 %v671_v0, 0.0 }
 0x18f   : > { %v678_v2 = vsel %vm677_vm11, %v672_v1, 0.0 }
 0x190   : > { %v679_v3 = vpack.c.bf16 %v678_v2, %v678_v2  ;;  %v662_v4 = vpop.f32.mrf.mxu0 }
 0x192   : > { %680 = vst [vmem:[%s1081_s10] sm:$0xf] %v679_v3 }
 0x193 PF: > { %s14_s19 = sadd.s32 1, %s998_s19   ;;  %s1164_s15 = smov %s990_s17 }
 0x194   : > { %p11_p1 = scmp.ge.s32.totalorder %s14_s19, 20   ;;  %s1165_s16 = smov %s994_s18 }
 0x195   : > { %s1166_s17 = smov %s1169_s20  ;;  %s1167_s18 = smov %s1173_s21 }
 0x196   :  { %13 = sbr.rel (!%p11_p1) target bundleno = 3 (0x3), region = 93 }

</bundles_post_ra>
